<compile_context>
chip_gen: v7x
topology: tpu7x:2x2x1
jax: 0.10.0
libtpu: 0.0.40
codegen_flags: <defaults>
</compile_context>

<pallas_src>
import functools

import jax
import jax.numpy as jnp
from jax.experimental import pallas as pl
from jax.experimental.pallas import tpu as pltpu


def _round_up(x, m):
    return ((x + m - 1) // m) * m


def _layernorm_noaffine(h, eps):
    # gamma/beta are folded into the next linear on the host; one-pass
    # sum / sum-of-squares -> back-to-back XLU reductions (fine in f32 at
    # these activation scales).
    inv_n = 1.0 / h.shape[-1]
    s = jnp.sum(h, axis=-1, keepdims=True)
    s2 = jnp.sum(h * h, axis=-1, keepdims=True)
    mu = s * inv_n
    var = s2 * inv_n - mu * mu
    return (h - mu) * jax.lax.rsqrt(var + eps)


def actor_kernel(
    x_ref,       # (TB, state_dim)  batch tile
    w1_ref,      # (state_dim, H)   fc1 with input affine + ScalingLayer folded
    brow_ref,    # (2, H)           row 0: b1 (folded), row 1: b2 (LN1 folded)
    w2_ref,      # (H, H)           fc2 with LN1 gamma folded (matmul dtype)
    w3_ref,      # (H, A)           fc3 with LN2 gamma folded (matmul dtype)
    b3_ref,      # (1, A)           b3 with LN2 beta folded
    out_ref,     # (TB, A)
):
    eps = 1e-5
    neg_slope = 0.01
    state_dim = w1_ref.shape[0]

    x = x_ref[...].astype(jnp.float32)

    # --- fc1 on the VPU: K = state_dim is tiny, an MXU tile would be ~98%
    #     padding.  (input normalization + ScalingLayer already folded in.)
    h = x[:, 0:1] * w1_ref[0:1, :]
    for k in range(1, state_dim):
        h = h + x[:, k:k + 1] * w1_ref[k:k + 1, :]
    h = h + brow_ref[0:1, :]
    h = jnp.where(h > 0, h, neg_slope * h)                  # LeakyReLU(0.01)
    h = _layernorm_noaffine(h, eps)                         # affine -> in w2/b2

    # --- fc2: Linear(H, H) + LeakyReLU + LayerNorm (MXU, f32 accumulation) ---
    h = jnp.dot(h.astype(w2_ref.dtype), w2_ref[...],
                preferred_element_type=jnp.float32) + brow_ref[1:2, :]
    h = jnp.where(h > 0, h, neg_slope * h)
    h = _layernorm_noaffine(h, eps)                         # affine -> in w3/b3

    # --- fc3: Linear(H, A) + Tanh; narrow output (A = action_dim) ---
    o = jnp.dot(h.astype(w3_ref.dtype), w3_ref[...],
                preferred_element_type=jnp.float32) + b3_ref[...]
    out_ref[...] = jnp.tanh(o).astype(out_ref.dtype)


def prepare_actor_params(p, *, matmul_dtype=jnp.bfloat16):
    """Host-side parameter preparation (run once per parameter update, not per
    forward call).  All folds are done in f32 before any bf16 cast."""
    # fold (x - shift)/scale and ScalingLayer exp(log_scale) into fc1
    exp_ls = jnp.exp(p["log_scale"])                               # (1, S)
    w1f = (exp_ls / p["scale"]).reshape(-1, 1) * p["w1"]
    b1f = p["b1"] - ((p["shift"] / p["scale"]) * exp_ls) @ p["w1"]

    # fold LayerNorm1 affine into fc2:  (z*g1 + be1) @ w2 + b2
    w2f = p["g1"].reshape(-1, 1) * p["w2"]
    b2f = p["be1"] @ p["w2"] + p["b2"]

    # fold LayerNorm2 affine into fc3:  (z*g2 + be2) @ w3 + b3
    w3f = p["g2"].reshape(-1, 1) * p["w3"]
    b3f = p["be2"] @ p["w3"] + p["b3"]

    return {
        "w1f": w1f.astype(jnp.float32),
        "brows": jnp.concatenate([b1f, b2f], axis=0).astype(jnp.float32),
        "w2f": w2f.astype(matmul_dtype),
        "w3f": w3f.astype(matmul_dtype),
        "b3f": b3f.astype(jnp.float32),
    }


def actor_forward(x, prep, *, block_batch=2048):
    """x: (B, state_dim) float32.  prep: output of prepare_actor_params."""
    x = x.astype(jnp.float32)
    B, state_dim = x.shape
    hidden = prep["w2f"].shape[0]
    action_dim = prep["w3f"].shape[1]

    # --- batch tile: multiple of 8 sublanes; keep the grid >= 2 steps when
    #     possible so ("parallel",) can shard across both v7x TensorCores.
    tb_cap = _round_up(max(block_batch, 8), 8)
    tb_half = _round_up(max(-(-B // 2), 1), 8)      # ceil(B/2) rounded to 8
    tb = max(min(tb_cap, tb_half), 8)
    b_pad = _round_up(B, tb)
    if b_pad != B:
        x = jnp.pad(x, ((0, b_pad - B), (0, 0)))
    grid = (b_pad // tb,)

    def resident(shape):
        # params: same block every grid step -> stay VMEM-resident
        return pl.BlockSpec(shape, lambda i: (0, 0))

    inputs = (x, prep["w1f"], prep["brows"], prep["w2f"], prep["w3f"], prep["b3f"])
    in_specs = [pl.BlockSpec((tb, state_dim), lambda i: (i, 0))]
    in_specs += [resident(a.shape) for a in inputs[1:]]

    # --- VMEM budget (explicit: v5e scoped default is 16 MiB, v7x has only
    #     64 MiB physical).  Weights are tiny; activations dominate.
    weight_bytes = sum(int(a.size) * a.dtype.itemsize for a in inputs[1:])
    io_bytes = 2 * (tb * state_dim * 4 + tb * action_dim * 4)   # double-buffered
    act_bytes = 12 * tb * hidden * 4                            # f32 temporaries headroom
    vmem_limit = min(2 * weight_bytes + io_bytes + act_bytes + (2 << 20), 64 << 20)

    # --- advisory cost estimate so XLA schedules/overlaps this small kernel
    flops = 2 * b_pad * (state_dim * hidden + hidden * hidden + hidden * action_dim) \
        + 12 * b_pad * hidden
    transcendentals = b_pad * action_dim + 2 * b_pad
    bytes_accessed = b_pad * (state_dim + action_dim) * 4 + weight_bytes

    out = pl.pallas_call(
        actor_kernel,
        out_shape=jax.ShapeDtypeStruct((b_pad, action_dim), jnp.float32),
        grid=grid,
        in_specs=in_specs,
        # narrow output: last dim = full array dim (legal even though < 128);
        # 32x fewer store bytes than padding action_dim up to 128.
        out_specs=pl.BlockSpec((tb, action_dim), lambda i: (i, 0)),
        compiler_params=pltpu.CompilerParams(
            dimension_semantics=("parallel",),      # v7x: shard batch over 2 TCs
            vmem_limit_bytes=int(vmem_limit),
        ),
        cost_estimate=pl.CostEstimate(
            flops=int(flops),
            transcendentals=int(transcendentals),
            bytes_accessed=int(bytes_accessed),
        ),
    )(*inputs)

    return out[:B]


def init_params(key, state_dim, action_dim, hidden=256):
    k1, k2, k3 = jax.random.split(key, 3)

    def linear_init(k, fan_in, fan_out):
        # PyTorch nn.Linear default: U(-1/sqrt(fan_in), 1/sqrt(fan_in))
        bound = 1.0 / jnp.sqrt(fan_in)
        kw, kb = jax.random.split(k)
        w = jax.random.uniform(kw, (fan_in, fan_out), jnp.float32, -bound, bound)
        b = jax.random.uniform(kb, (1, fan_out), jnp.float32, -bound, bound)
        return w, b

    w1, b1 = linear_init(k1, state_dim, hidden)
    w2, b2 = linear_init(k2, hidden, hidden)
    w3, b3 = linear_init(k3, hidden, action_dim)

    return {
        "shift": jnp.array([[250.0, 125.0]], jnp.float32),
        "scale": jnp.array([[150.0, 75.0]], jnp.float32),
        "log_scale": jnp.zeros((1, state_dim), jnp.float32),  # ScalingLayer init
        "w1": w1, "b1": b1,
        "g1": jnp.ones((1, hidden), jnp.float32),
        "be1": jnp.zeros((1, hidden), jnp.float32),
        "w2": w2, "b2": b2,
        "g2": jnp.ones((1, hidden), jnp.float32),
        "be2": jnp.zeros((1, hidden), jnp.float32),
        "w3": w3, "b3": b3,
    }


def actor_reference(x, p):
    """Pure-JAX f32 reference matching the PyTorch forward."""
    x = (x - p["shift"]) / p["scale"]
    x = x * jnp.exp(p["log_scale"])

    def ln(h, g, b):
        mu = jnp.mean(h, axis=-1, keepdims=True)
        var = jnp.mean((h - mu) ** 2, axis=-1, keepdims=True)
        return (h - mu) / jnp.sqrt(var + 1e-5) * g + b

    h = x @ p["w1"] + p["b1"]
    h = jnp.where(h > 0, h, 0.01 * h)
    h = ln(h, p["g1"], p["be1"])
    h = h @ p["w2"] + p["b2"]
    h = jnp.where(h > 0, h, 0.01 * h)
    h = ln(h, p["g2"], p["be2"])
    return jnp.tanh(h @ p["w3"] + p["b3"])


if __name__ == "__main__":
    # The forward hard-codes a 2-element normalization vector -> state_dim = 2.
    state_dim, action_dim, batch = 2, 4, 96

    key = jax.random.PRNGKey(0)
    kp, kx = jax.random.split(key)
    params = init_params(kp, state_dim, action_dim)

    # States roughly in the range implied by the normalization constants.
    x = jax.random.uniform(kx, (batch, state_dim), jnp.float32) \
        * jnp.array([500.0, 250.0])

    ref = actor_reference(x, params)

    # Parameter preparation is hoisted out of the hot forward path.
    prep_f32 = prepare_actor_params(params, matmul_dtype=jnp.float32)
    prep_bf16 = prepare_actor_params(params, matmul_dtype=jnp.bfloat16)

    # f32 MXU path: tight check (block_batch=32 -> 3 grid steps exercised).
    fwd_f32 = jax.jit(functools.partial(actor_forward, block_batch=32))
    out_f32 = jax.block_until_ready(fwd_f32(x, prep_f32))
    assert out_f32.shape == (batch, action_dim)
    assert jnp.allclose(out_f32, ref, atol=1e-4, rtol=1e-4)

    # bf16 MXU path with the default (large) tile: tb is clamped to ceil(B/2)
    # so the grid still has 2 steps (both v7x TCs usable); looser tolerance.
    fwd_bf16 = jax.jit(actor_forward)
    out_bf16 = jax.block_until_ready(fwd_bf16(x, prep_bf16))
    assert out_bf16.shape == (batch, action_dim)
    assert jnp.allclose(out_bf16, ref, atol=3e-2, rtol=3e-2)

    print("KERNEL_OK")
</pallas_src>

<mosaic_0001>
module attributes {stable_mosaic.version = 11 : i64} {
  func.func @actor_kernel(%arg0: i32, %arg1: memref<32x2xf32, #tpu.memory_space<vmem>>, %arg2: memref<2x256xf32, #tpu.memory_space<vmem>>, %arg3: memref<2x256xf32, #tpu.memory_space<vmem>>, %arg4: memref<256x256xf32, #tpu.memory_space<vmem>>, %arg5: memref<256x4xf32, #tpu.memory_space<vmem>>, %arg6: memref<1x4xf32, #tpu.memory_space<vmem>>, %arg7: memref<32x4xf32, #tpu.memory_space<vmem>>) attributes {dimension_semantics = [#tpu.dimension_semantics<parallel>], iteration_bounds = array<i64: 3>, scalar_prefetch = 0 : i64, scratch_operands = 0 : i64, tpu.core_type = #tpu.core_type<tc>, window_params = [{transform_indices = @transform_0, window_bounds = array<i64: 32, 2>}, {pipeline_mode = #tpu.pipeline_mode<synchronous>, transform_indices = @transform_1, window_bounds = array<i64: 2, 256>}, {pipeline_mode = #tpu.pipeline_mode<synchronous>, transform_indices = @transform_2, window_bounds = array<i64: 2, 256>}, {pipeline_mode = #tpu.pipeline_mode<synchronous>, transform_indices = @transform_3, window_bounds = array<i64: 256, 256>}, {pipeline_mode = #tpu.pipeline_mode<synchronous>, transform_indices = @transform_4, window_bounds = array<i64: 256, 4>}, {pipeline_mode = #tpu.pipeline_mode<synchronous>, transform_indices = @transform_5, window_bounds = array<i64: 1, 4>}, {transform_indices = @transform_6, window_bounds = array<i64: 32, 4>}]} {
    %c0 = arith.constant 0 : index
    %c0_0 = arith.constant 0 : index
    %0 = vector.load %arg1[%c0, %c0_0] : memref<32x2xf32, #tpu.memory_space<vmem>>, vector<32x2xf32>
    %1 = vector.extract_strided_slice %0 {offsets = [0, 0], sizes = [32, 1], strides = [1, 1]} : vector<32x2xf32> to vector<32x1xf32>
    %c0_1 = arith.constant 0 : index
    %c0_2 = arith.constant 0 : index
    %2 = vector.load %arg2[%c0_1, %c0_2] : memref<2x256xf32, #tpu.memory_space<vmem>>, vector<1x256xf32>
    %3 = vector.broadcast %1 : vector<32x1xf32> to vector<32x256xf32>
    %4 = vector.broadcast %2 : vector<1x256xf32> to vector<32x256xf32>
    %5 = arith.mulf %3, %4 : vector<32x256xf32>
    %6 = vector.extract_strided_slice %0 {offsets = [0, 1], sizes = [32, 1], strides = [1, 1]} : vector<32x2xf32> to vector<32x1xf32>
    %c1 = arith.constant 1 : index
    %c0_3 = arith.constant 0 : index
    %7 = vector.load %arg2[%c1, %c0_3] : memref<2x256xf32, #tpu.memory_space<vmem>>, vector<1x256xf32>
    %8 = vector.broadcast %6 : vector<32x1xf32> to vector<32x256xf32>
    %9 = vector.broadcast %7 : vector<1x256xf32> to vector<32x256xf32>
    %10 = arith.mulf %8, %9 : vector<32x256xf32>
    %11 = arith.addf %5, %10 : vector<32x256xf32>
    %c0_4 = arith.constant 0 : index
    %c0_5 = arith.constant 0 : index
    %12 = vector.load %arg3[%c0_4, %c0_5] : memref<2x256xf32, #tpu.memory_space<vmem>>, vector<1x256xf32>
    %13 = vector.broadcast %12 : vector<1x256xf32> to vector<32x256xf32>
    %14 = arith.addf %11, %13 : vector<32x256xf32>
    %cst = arith.constant 0.000000e+00 : f32
    %15 = vector.broadcast %cst : f32 to vector<32x256xf32>
    %16 = arith.cmpf ogt, %14, %15 : vector<32x256xf32>
    %cst_6 = arith.constant 0.00999999977 : f32
    %17 = vector.broadcast %cst_6 : f32 to vector<32x256xf32>
    %18 = arith.mulf %17, %14 : vector<32x256xf32>
    %19 = arith.select %16, %14, %18 : vector<32x256xi1>, vector<32x256xf32>
    %cst_7 = arith.constant dense<0.000000e+00> : vector<32xf32>
    %20 = vector.multi_reduction <add>, %19, %cst_7 [1] : vector<32x256xf32> to vector<32xf32>
    %21 = vector.shape_cast %20 : vector<32xf32> to vector<32x1xf32>
    %22 = arith.mulf %19, %19 : vector<32x256xf32>
    %cst_8 = arith.constant dense<0.000000e+00> : vector<32xf32>
    %23 = vector.multi_reduction <add>, %22, %cst_8 [1] : vector<32x256xf32> to vector<32xf32>
    %24 = vector.shape_cast %23 : vector<32xf32> to vector<32x1xf32>
    %cst_9 = arith.constant 3.906250e-03 : f32
    %25 = vector.broadcast %cst_9 : f32 to vector<32x1xf32>
    %26 = arith.mulf %21, %25 : vector<32x1xf32>
    %cst_10 = arith.constant 3.906250e-03 : f32
    %27 = vector.broadcast %cst_10 : f32 to vector<32x1xf32>
    %28 = arith.mulf %24, %27 : vector<32x1xf32>
    %29 = arith.mulf %26, %26 : vector<32x1xf32>
    %30 = arith.subf %28, %29 : vector<32x1xf32>
    %31 = vector.broadcast %26 : vector<32x1xf32> to vector<32x256xf32>
    %32 = arith.subf %19, %31 : vector<32x256xf32>
    %cst_11 = arith.constant 9.99999974E-6 : f32
    %33 = vector.broadcast %cst_11 : f32 to vector<32x1xf32>
    %34 = arith.addf %30, %33 : vector<32x1xf32>
    %35 = math.rsqrt %34 : vector<32x1xf32>
    %36 = vector.broadcast %35 : vector<32x1xf32> to vector<32x256xf32>
    %37 = arith.mulf %32, %36 : vector<32x256xf32>
    %c0_12 = arith.constant 0 : index
    %c0_13 = arith.constant 0 : index
    %38 = vector.load %arg4[%c0_12, %c0_13] : memref<256x256xf32, #tpu.memory_space<vmem>>, vector<256x256xf32>
    %cst_14 = arith.constant dense<0.000000e+00> : vector<32x256xf32>
    %39 = tpu.matmul %37, %38, %cst_14 {dimension_numbers = #tpu.dot_dimension_numbers<[1], [0], [0], [1], [0, 0, 1, 1], [], []>} : vector<32x256xf32>, vector<256x256xf32>, vector<32x256xf32> -> vector<32x256xf32>
    %c1_15 = arith.constant 1 : index
    %c0_16 = arith.constant 0 : index
    %40 = vector.load %arg3[%c1_15, %c0_16] : memref<2x256xf32, #tpu.memory_space<vmem>>, vector<1x256xf32>
    %41 = vector.broadcast %40 : vector<1x256xf32> to vector<32x256xf32>
    %42 = arith.addf %39, %41 : vector<32x256xf32>
    %cst_17 = arith.constant 0.000000e+00 : f32
    %43 = vector.broadcast %cst_17 : f32 to vector<32x256xf32>
    %44 = arith.cmpf ogt, %42, %43 : vector<32x256xf32>
    %cst_18 = arith.constant 0.00999999977 : f32
    %45 = vector.broadcast %cst_18 : f32 to vector<32x256xf32>
    %46 = arith.mulf %45, %42 : vector<32x256xf32>
    %47 = arith.select %44, %42, %46 : vector<32x256xi1>, vector<32x256xf32>
    %cst_19 = arith.constant dense<0.000000e+00> : vector<32xf32>
    %48 = vector.multi_reduction <add>, %47, %cst_19 [1] : vector<32x256xf32> to vector<32xf32>
    %49 = vector.shape_cast %48 : vector<32xf32> to vector<32x1xf32>
    %50 = arith.mulf %47, %47 : vector<32x256xf32>
    %cst_20 = arith.constant dense<0.000000e+00> : vector<32xf32>
    %51 = vector.multi_reduction <add>, %50, %cst_20 [1] : vector<32x256xf32> to vector<32xf32>
    %52 = vector.shape_cast %51 : vector<32xf32> to vector<32x1xf32>
    %cst_21 = arith.constant 3.906250e-03 : f32
    %53 = vector.broadcast %cst_21 : f32 to vector<32x1xf32>
    %54 = arith.mulf %49, %53 : vector<32x1xf32>
    %cst_22 = arith.constant 3.906250e-03 : f32
    %55 = vector.broadcast %cst_22 : f32 to vector<32x1xf32>
    %56 = arith.mulf %52, %55 : vector<32x1xf32>
    %57 = arith.mulf %54, %54 : vector<32x1xf32>
    %58 = arith.subf %56, %57 : vector<32x1xf32>
    %59 = vector.broadcast %54 : vector<32x1xf32> to vector<32x256xf32>
    %60 = arith.subf %47, %59 : vector<32x256xf32>
    %cst_23 = arith.constant 9.99999974E-6 : f32
    %61 = vector.broadcast %cst_23 : f32 to vector<32x1xf32>
    %62 = arith.addf %58, %61 : vector<32x1xf32>
    %63 = math.rsqrt %62 : vector<32x1xf32>
    %64 = vector.broadcast %63 : vector<32x1xf32> to vector<32x256xf32>
    %65 = arith.mulf %60, %64 : vector<32x256xf32>
    %c0_24 = arith.constant 0 : index
    %c0_25 = arith.constant 0 : index
    %66 = vector.load %arg5[%c0_24, %c0_25] : memref<256x4xf32, #tpu.memory_space<vmem>>, vector<256x4xf32>
    %cst_26 = arith.constant dense<0.000000e+00> : vector<32x4xf32>
    %67 = tpu.matmul %65, %66, %cst_26 {dimension_numbers = #tpu.dot_dimension_numbers<[1], [0], [0], [1], [0, 0, 1, 1], [], []>} : vector<32x256xf32>, vector<256x4xf32>, vector<32x4xf32> -> vector<32x4xf32>
    %c0_27 = arith.constant 0 : index
    %c0_28 = arith.constant 0 : index
    %68 = vector.load %arg6[%c0_27, %c0_28] : memref<1x4xf32, #tpu.memory_space<vmem>>, vector<1x4xf32>
    %69 = vector.broadcast %68 : vector<1x4xf32> to vector<32x4xf32>
    %70 = arith.addf %67, %69 : vector<32x4xf32>
    %71 = math.tanh %70 : vector<32x4xf32>
    %c0_29 = arith.constant 0 : index
    %c0_30 = arith.constant 0 : index
    %72 = vector.load %arg7[%c0_29, %c0_30] : memref<32x4xf32, #tpu.memory_space<vmem>>, vector<32x4xf32>
    tpu.vector_store %arg7[%c0_29, %c0_30], %71 {strides = array<i32>} : memref<32x4xf32, #tpu.memory_space<vmem>>, vector<32x4xf32>,
    return
  }
  func.func @transform_0(%arg0: i32) -> (i32, i32) {
    %c0_i32 = arith.constant 0 : i32
    %c0_i32_0 = arith.constant 0 : i32
    return %arg0, %c0_i32 : i32, i32
  }
  func.func @transform_1(%arg0: i32) -> (i32, i32) {
    %c0_i32 = arith.constant 0 : i32
    %c0_i32_0 = arith.constant 0 : i32
    %c0_i32_1 = arith.constant 0 : i32
    return %c0_i32, %c0_i32_0 : i32, i32
  }
  func.func @transform_2(%arg0: i32) -> (i32, i32) {
    %c0_i32 = arith.constant 0 : i32
    %c0_i32_0 = arith.constant 0 : i32
    %c0_i32_1 = arith.constant 0 : i32
    return %c0_i32, %c0_i32_0 : i32, i32
  }
  func.func @transform_3(%arg0: i32) -> (i32, i32) {
    %c0_i32 = arith.constant 0 : i32
    %c0_i32_0 = arith.constant 0 : i32
    %c0_i32_1 = arith.constant 0 : i32
    return %c0_i32, %c0_i32_0 : i32, i32
  }
  func.func @transform_4(%arg0: i32) -> (i32, i32) {
    %c0_i32 = arith.constant 0 : i32
    %c0_i32_0 = arith.constant 0 : i32
    %c0_i32_1 = arith.constant 0 : i32
    return %c0_i32, %c0_i32_0 : i32, i32
  }
  func.func @transform_5(%arg0: i32) -> (i32, i32) {
    %c0_i32 = arith.constant 0 : i32
    %c0_i32_0 = arith.constant 0 : i32
    %c0_i32_1 = arith.constant 0 : i32
    return %c0_i32, %c0_i32_0 : i32, i32
  }
  func.func @transform_6(%arg0: i32) -> (i32, i32) {
    %c0_i32 = arith.constant 0 : i32
    %c0_i32_0 = arith.constant 0 : i32
    return %arg0, %c0_i32 : i32, i32
  }
}

</mosaic_0001>

<bundles_post_ra>
// kernel: actor_forward.1
= control target key start
LH: loop header
LB: loop body
LE: loop exit
PB: predicated region body
PF: predicated region fallthrough
CT: control target
= control target key end

     0   :  { %11 = vsyncpa [#allocation3], 0  ;;  %s1226_s21 = smov 0   ;;  %s1514_s0 = inlined_call_operand.vmem [shape: f32[96,2], index: 0, kind: input, shape index: {}]   ;;  %s1515_s1 = inlined_call_operand.vmem [shape: f32[2,256], index: 1, kind: input, shape index: {}]   ;;  %s1516_s2 = inlined_call_operand.vmem [shape: f32[2,256], index: 2, kind: input, shape index: {}]   ;;  %s1517_s3 = inlined_call_operand.hbm [shape: f32[256,256], index: 3, kind: input, shape index: {}]   ;;  %s1518_s4 = inlined_call_operand.vmem [shape: f32[256,4], index: 4, kind: input, shape index: {}]   ;;  %s1519_s5 = inlined_call_operand.vmem [shape: f32[1,4], index: 5, kind: input, shape index: {}]   ;;  %s1520_s6 = inlined_call_operand.vmem [shape: f32[96,4], index: 6, kind: output, shape index: {}]  }
   0x1 LB: > { %s938_s22 = sadd.s32 4294967295, %s1184_s21   ;;  %p940_p0 = scmp.ge.s32.totalorder %s1184_s21, 1  ;;  %s1184_s21 = sphi %s1226_s21, %s17_s21  }
   0x2   : > { %p179_p1 = scmp.lt.s32.totalorder %s1184_s21, 4  ;;  %s1186_s23 = smov [#allocation2]  }
   0x3   : > { %s197_s24 = sshll.u32 %s1186_s23, 4  ;;  %p1240_p3 = scmp.eq.s32.totalorder %s938_s22, 0  ;;  %s198_s24 = int_to_ptr.vmem [resolvable:$true] %s197_s24 }
   0x4   : > { %p1234_p2 = pnand %p940_p0, %p179_p1  ;;  %s1146_s30 = scalar_lea.hbm %s1517_s3, 8192 }
   0x5   : > { %s1525_s26 = scalar_select %p1240_p3, 1, 0 }
   0x6   : > { %s1524_s25 = scalar_select %p1234_p2, 1, 0 }
   0x7   : > { %p1098_p4 = pneg %p1234_p2  ;;  %p1147_p6 = scmp.ne.s32.totalorder %s1517_s3, %s1146_s30 }
   0x8   : > { %p1153_p10 = scmp.lt.u32.totalorder %s1146_s30, %s1517_s3 }
   0x9   : > { %p1248_p5 = pnand %p1240_p3, %p1098_p4 }
   0xb   : > { %p1148_p7 = pneg %p1248_p5 }
   0xd   : > { %p1149_p8 = pnand %p1148_p7, %p1147_p6 }
   0xf   : > { %p1150_p9 = pneg %p1149_p8 }
  0x11   : > { %p1155_p11 = pnand %p1153_p10, %p1150_p9 }
  0x13   : > { %1158 = shalt.err (!%p1155_p11)
}
  0x14   : > { %s1159_s11 = scalar_lea.vmem %s198_s24, 8192  ;;  %p1167_p1 = scmp.lt.s32.totalorder %s198_s24, %s198_s24 }
  0x15   : > { %p1160_p12 = scmp.ne.s32.totalorder %s198_s24, %s1159_s11  ;;  %p1168_p4 = scmp.lt.s32.totalorder %s1159_s11, %s1159_s11 }
  0x17   : > { %p1162_p13 = pnand %p1160_p12, %p1148_p7  ;;  %p1169_p3 = por %p1168_p4, %p1167_p1 }
  0x19   : > { %p1163_p0 = pneg %p1162_p13 }
  0x1b   : > { %p1170_p2 = pnand %p1169_p3, %p1163_p0 }
  0x1d   : > { %1173 = shalt.err (!%p1170_p2)
}
  0x1e   : > { %s1187_s12 = smov 256   ;;  %s1188_s13 = smov 16  }
  0x1f   : > { %1101 = dma.hbm_to_vmem [thread:$0]  (!%p1248_p5), %s1517_s3, 8192, %s198_s24, [#allocation3], %s1187_s12, %s1187_s12, %s1188_s13  }
  0x20   : > { %p1527_p6 = scmp.ne.s32.totalorder %s1524_s25, 0 }
  0x21   : > { %p1528_p8 = scmp.ne.s32.totalorder (!%p1527_p6), %s1525_s26, 0 }
  0x22   : > { %228 = sbr.rel (%p1527_p6) target bundleno = 985 (0x3d9), region = 44 }
  0x29   : > { %1179 = dma.done.wait (%p1528_p8), [#allocation3], 8192  }
  0x2a   : > { %1181 = vsyncadd (%p1528_p8), [#allocation3], 4294959104  ;;  %s945_s16 = sshll.u32 %s938_s22, 2  ;;  %v1189_v0 = vmov 0   ;;  %v1190_v3 = vmov 1   ;;  %v476_v6 = vld [vmem:[#allocation2 + $0x8] sm:$0xff] }
  0x2b   : > { %1119 = vset.pattern.permute.xlu1 %v1189_v0  ;;  %1117 = vset.pattern.permute.xlu0 %v1189_v0  ;;  %p259_p2 = scmp.lt.s32.totalorder %s945_s16, 11  ;;  %v478_v7 = vld [vmem:[#allocation2 + $0x18] sm:$0xff]  ;;  %v475_v8 = vld [vmem:[#allocation2] sm:$0xff]  ;;  %v477_v10 = vld [vmem:[#allocation2 + $0x10] sm:$0xff] }
  0x2c   : > { %v998_v9 = vpack.c.bf16 %v478_v7, %v476_v6  ;;  %v480_v11 = vld [vmem:[#allocation2 + $0x28] sm:$0xff]  ;;  %v482_v12 = vld [vmem:[#allocation2 + $0x38] sm:$0xff]  ;;  %v1000_v13 = vpack.c.bf16 %v477_v10, %v475_v8  ;;  %v479_v15 = vld [vmem:[#allocation2 + $0x20] sm:$0xff]  ;;  %v296_v8 = vlaneseq }
  0x2d   : > { %s1530_s16 = smov (!%p259_p2, %s945_s16), 11  ;;  %v1002_v14 = vpack.c.bf16 %v482_v12, %v480_v11  ;;  %v481_v16 = vld [vmem:[#allocation2 + $0x30] sm:$0xff]  ;;  %v484_v17 = vld [vmem:[#allocation2 + $0x48] sm:$0xff]  ;;  %v486_v18 = vld [vmem:[#allocation2 + $0x58] sm:$0xff] }
  0x2e   : > { %s946_s17 = sshll.u32 %s1530_s16, 3  ;;  %999 = vmatprep.subr.bf16.mxu0 %v998_v9  ;;  %v1004_v19 = vpack.c.bf16 %v481_v16, %v479_v15  ;;  %v1006_v20 = vpack.c.bf16 %v486_v18, %v484_v17  ;;  %v483_v21 = vld [vmem:[#allocation2 + $0x40] sm:$0xff]  ;;  %v485_v22 = vld [vmem:[#allocation2 + $0x50] sm:$0xff]  ;;  %v488_v23 = vld [vmem:[#allocation2 + $0x68] sm:$0xff]  ;;  %v297_v9 = vshrl.u32 %v296_v8, 7 }
  0x2f   : > { %s262_s20 = scalar_lea.vmem %s1514_s0, %s946_s17  ;;  %1001 = vmatpush1.bf16.msra.mxu0 %v1000_v13  ;;  %v490_v24 = vld [vmem:[#allocation2 + $0x78] sm:$0xff]  ;;  %v1008_v25 = vpack.c.bf16 %v485_v22, %v483_v21  ;;  %v487_v27 = vld [vmem:[#allocation2 + $0x60] sm:$0xff]  ;;  %v489_v28 = vld [vmem:[#allocation2 + $0x70] sm:$0xff]  ;;  %s268_s11 = scalar_lea.vmem %s1520_s6, %s946_s17 }
  0x30   : > { %v271_v1 = vld [vmem:[%s262_s20 + $0x8] sm:$0xff]  ;;  %v270_v2 = vld [vmem:[%s262_s20] sm:$0xff]  ;;  %v272_v4 = vld [vmem:[%s262_s20 + $0x10] sm:$0xff]  ;;  %1003 = vmatprep.subr.bf16.mxu0 %v1002_v14  ;;  %v1010_v26 = vpack.c.bf16 %v490_v24, %v488_v23  ;;  %v1012_v31 = vpack.c.bf16 %v489_v28, %v487_v27  ;;  %v1284_v10 = vsub.s32 0, %v297_v9  ;;  %v1286_v11 = vsub.s32 1, %v297_v9 }
  0x31   : > { %282 = vperm.xlu1 %1119, %v271_v1   ;;  %277 = vperm.xlu0 %1117, %v270_v2   ;;  %v273_v5 = vld [vmem:[%s262_s20 + $0x18] sm:$0xff]  ;;  %v492_v29 = vld [vmem:[#allocation2 + $0x88] sm:$0xff]  ;;  %v491_v33 = vld [vmem:[#allocation2 + $0x80] sm:$0xff] }
  0x32   : > { %v494_v30 = vld [vmem:[#allocation2 + $0x98] sm:$0xff]  ;;  %v493_v34 = vld [vmem:[#allocation2 + $0x90] sm:$0xff]  ;;  %v496_v35 = vld [vmem:[#allocation2 + $0xa8] sm:$0xff] }
  0x33   : > { %1005 = vmatpush1.bf16.msra.mxu0 %v1004_v19  ;;  %v1014_v32 = vpack.c.bf16 %v494_v30, %v492_v29  ;;  %v498_v36 = vld [vmem:[#allocation2 + $0xb8] sm:$0xff]  ;;  %v1016_v37 = vpack.c.bf16 %v493_v34, %v491_v33  ;;  %v495_v39 = vld [vmem:[#allocation2 + $0xa0] sm:$0xff]  ;;  %v497_v40 = vld [vmem:[#allocation2 + $0xb0] sm:$0xff] }
  0x34   : > { %1007 = vmatprep.subr.bf16.mxu0 %v1006_v20  ;;  %v1018_v38 = vpack.c.bf16 %v498_v36, %v496_v35  ;;  %v500_v41 = vld [vmem:[#allocation2 + $0xc8] sm:$0xff]  ;;  %v502_v42 = vld [vmem:[#allocation2 + $0xd8] sm:$0xff]  ;;  %v1020_v43 = vpack.c.bf16 %v497_v40, %v495_v39  ;;  %v499_v45 = vld [vmem:[#allocation2 + $0xc0] sm:$0xff] }
  0x35   : > { %1120 = vset.pattern.permute.xlu1 %v1190_v3  ;;  %1118 = vset.pattern.permute.xlu0 %v1190_v3  ;;  %v1022_v44 = vpack.c.bf16 %v502_v42, %v500_v41  ;;  %v501_v46 = vld [vmem:[#allocation2 + $0xd0] sm:$0xff]  ;;  %v504_v47 = vld [vmem:[#allocation2 + $0xe8] sm:$0xff]  ;;  %v506_v48 = vld [vmem:[#allocation2 + $0xf8] sm:$0xff] }
  0x36   : > { %321 = vperm.xlu1 %1120, %v271_v1   ;;  %317 = vperm.xlu0 %1118, %v270_v2   ;;  %v1024_v49 = vpack.c.bf16 %v501_v46, %v499_v45  ;;  %v1026_v50 = vpack.c.bf16 %v506_v48, %v504_v47  ;;  %v503_v51 = vld [vmem:[#allocation2 + $0xe0] sm:$0xff]  ;;  %v505_v52 = vld [vmem:[#allocation2 + $0xf0] sm:$0xff]  ;;  %v508_v53 = vld [vmem:[#allocation2 + $0x108] sm:$0xff] }
  0x37   : > { %1009 = vmatpush1.bf16.msra.mxu0 %v1008_v25  ;;  %v510_v54 = vld [vmem:[#allocation2 + $0x118] sm:$0xff]  ;;  %v1028_v55 = vpack.c.bf16 %v505_v52, %v503_v51  ;;  %v507_v57 = vld [vmem:[#allocation2 + $0x100] sm:$0xff]  ;;  %v509_v58 = vld [vmem:[#allocation2 + $0x110] sm:$0xff] }
  0x38   : > { %1011 = vmatprep.subr.bf16.mxu0 %v1010_v26  ;;  %v1030_v56 = vpack.c.bf16 %v510_v54, %v508_v53  ;;  %v512_v59 = vld [vmem:[#allocation2 + $0x128] sm:$0xff]  ;;  %v514_v60 = vld [vmem:[#allocation2 + $0x138] sm:$0xff]  ;;  %v1032_v61 = vpack.c.bf16 %v509_v58, %v507_v57  ;;  %v511_v63 = vld [vmem:[#allocation2 + $0x120] sm:$0xff] }
  0x39   : > { %v1034_v62 = vpack.c.bf16 %v514_v60, %v512_v59  ;;  %v516_v1 = vld [vmem:[#allocation2 + $0x148] sm:$0xff]  ;;  %v518_v2 = vld [vmem:[#allocation2 + $0x158] sm:$0xff]  ;;  %v517_v6 = vld [vmem:[#allocation2 + $0x150] sm:$0xff] }
  0x3a   : > { %1121 = vset.pattern.permute.xlu1 %v1189_v0  ;;  %325 = vperm.xlu0 %1118, %v272_v4   ;;  %v513_v0 = vld [vmem:[#allocation2 + $0x130] sm:$0xff]  ;;  %v274_v12 = vld [vmem:[%s1515_s1] ss:$2 sm:$0x3] }
  0x3b   : > { %287 = vperm.xlu1 %1121, %v272_v4   ;;  %1013 = vmatpush1.bf16.msra.mxu0 %v1012_v31  ;;  %v1036_v3 = vpack.c.bf16 %v513_v0, %v511_v63  ;;  %v1038_v4 = vpack.c.bf16 %v518_v2, %v516_v1  ;;  %v949_v13 = vld [vmem:[%s1515_s1 + $0x1] ss:$2 sm:$0x3]  ;;  %v299_v16 = vrot.slane %v274_v12, %v1284_v10  ;;  %v359_v20 = vld [vmem:[%s1516_s2] ss:$2 sm:$0x3] }
  0x3c   : > { %1015 = vmatprep.subr.bf16.mxu0 %v1014_v32  ;;  %v303_v17 = vrot.slane %v274_v12, %v1286_v11  ;;  %v336_v18 = vrot.slane %v949_v13, %v1284_v10  ;;  %v340_v19 = vrot.slane %v949_v13, %v1286_v11  ;;  %v364_v25 = vrot.slane %v359_v20, %v1284_v10 }
  0x3d   : > { %v368_v26 = vrot.slane %v359_v20, %v1286_v11 }
  0x3e   : > { %329 = vperm.xlu0 %1118, %v273_v5  }
  0x3f   : > { %292 = vperm.xlu1 %1121, %v273_v5   ;;  %1017 = vmatpush1.bf16.msra.mxu0 %v1016_v37  ;;  %v515_v5 = vld [vmem:[#allocation2 + $0x140] sm:$0xff] }
  0x40   : > { %1019 = vmatprep.subr.bf16.mxu0 %v1018_v38  ;;  %v1040_v7 = vpack.c.bf16 %v517_v6, %v515_v5 }
  0x43   : > { %1021 = vmatpush1.bf16.msra.mxu0 %v1020_v43 }
  0x44   : > { %1023 = vmatprep.subr.bf16.mxu0 %v1022_v44 }
  0x47   : > { %1025 = vmatpush1.bf16.msra.mxu0 %v1024_v49 }
  0x48   : > { %1027 = vmatprep.subr.bf16.mxu0 %v1026_v50 }
  0x4b   : > { %1029 = vmatpush1.bf16.msra.mxu0 %v1028_v55 }
  0x4c   : > { %1031 = vmatprep.subr.bf16.mxu0 %v1030_v56 }
  0x4f   : > { %1033 = vmatpush1.bf16.msra.mxu0 %v1032_v61 }
  0x50   : > { %1035 = vmatprep.subr.bf16.mxu0 %v1034_v62 }
  0x53   : > { %1037 = vmatpush1.bf16.msra.mxu0 %v1036_v3 }
  0x54   : > { %1039 = vmatprep.subr.bf16.mxu0 %v1038_v4 }
  0x57   : > { %1041 = vmatpush1.bf16.msra.mxu0 %v1040_v7 }
  0xb0   : > { %v278_v14 = vpop.permute.xlu0 %277  ;;  %v283_v15 = vpop.permute.xlu1 %282 }
  0xb1   : > { %v308_v21 = vmul.f32 %v299_v16, %v283_v15  ;;  %v309_v22 = vmul.f32 %v303_v17, %v283_v15  ;;  %v306_v23 = vmul.f32 %v299_v16, %v278_v14  ;;  %v307_v24 = vmul.f32 %v303_v17, %v278_v14 }
  0xb5   : > { %v322_v27 = vpop.permute.xlu1 %321  ;;  %v318_v28 = vpop.permute.xlu0 %317 }
  0xb6   : > { %v345_v29 = vmul.f32 %v336_v18, %v322_v27  ;;  %v346_v30 = vmul.f32 %v340_v19, %v322_v27  ;;  %v343_v31 = vmul.f32 %v336_v18, %v318_v28  ;;  %v344_v32 = vmul.f32 %v340_v19, %v318_v28 }
  0xb8   : > { %v353_v33 = vadd.f32 %v345_v29, %v308_v21  ;;  %v354_v34 = vadd.f32 %v346_v30, %v309_v22  ;;  %v351_v35 = vadd.f32 %v343_v31, %v306_v23  ;;  %v352_v36 = vadd.f32 %v344_v32, %v307_v24  ;;  %v520_v31 = vld [vmem:[#allocation2 + $0x168] sm:$0xff]  ;;  %v522_v32 = vld [vmem:[#allocation2 + $0x178] sm:$0xff] }
  0xb9   : > { %v326_v37 = vpop.permute.xlu0 %325 }
  0xba   : > { %v373_v38 = vadd.f32 %v364_v25, %v353_v33  ;;  %v374_v39 = vadd.f32 %v368_v26, %v354_v34  ;;  %v371_v40 = vadd.f32 %v364_v25, %v351_v35  ;;  %v372_v41 = vadd.f32 %v368_v26, %v352_v36  ;;  %v288_v42 = vpop.permute.xlu1 %287  ;;  %v519_v34 = vld [vmem:[#allocation2 + $0x160] sm:$0xff]  ;;  %v521_v35 = vld [vmem:[#allocation2 + $0x170] sm:$0xff] }
  0xbb   : > { %v347_v43 = vmul.f32 %v336_v18, %v326_v37  ;;  %v348_v44 = vmul.f32 %v340_v19, %v326_v37  ;;  %v310_v45 = vmul.f32 %v299_v16, %v288_v42  ;;  %v311_v46 = vmul.f32 %v303_v17, %v288_v42  ;;  %v524_v37 = vld [vmem:[#allocation2 + $0x188] sm:$0xff] }
  0xbc   : > { %vm379_vm0 = vcmp.gt.f32.partialorder %v371_v40, 0.0  ;;  %vm380_vm1 = vcmp.gt.f32.partialorder %v372_v41, 0.0  ;;  %v387_v47 = vmul.f32 0.01, %v371_v40  ;;  %v388_v48 = vmul.f32 0.01, %v372_v41 }
  0xbd   : > { %v355_v49 = vadd.f32 %v347_v43, %v310_v45  ;;  %v356_v50 = vadd.f32 %v348_v44, %v311_v46  ;;  %v330_v51 = vpop.permute.xlu0 %329  ;;  %vm381_vm2 = vcmp.gt.f32.partialorder %v373_v38, 0.0  ;;  %vm382_vm3 = vcmp.gt.f32.partialorder %v374_v39, 0.0  ;;  %v528_v43 = vld [vmem:[#allocation2 + $0x1a8] sm:$0xff]  ;;  %v530_v44 = vld [vmem:[#allocation2 + $0x1b8] sm:$0xff]  ;;  %v527_v46 = vld [vmem:[#allocation2 + $0x1a0] sm:$0xff] }
  0xbe   : > { %v349_v52 = vmul.f32 %v336_v18, %v330_v51  ;;  %v350_v53 = vmul.f32 %v340_v19, %v330_v51  ;;  %v293_v54 = vpop.permute.xlu1 %292  ;;  %v1303_v55 = vsel %vm379_vm0, %v371_v40, %v387_v47  ;;  %v1305_v56 = vsel %vm380_vm1, %v372_v41, %v388_v48  ;;  %v523_v40 = vld [vmem:[#allocation2 + $0x180] sm:$0xff]  ;;  %v525_v41 = vld [vmem:[#allocation2 + $0x190] sm:$0xff] }
  0xbf   : > { %v375_v57 = vadd.f32 %v364_v25, %v355_v49  ;;  %v376_v58 = vadd.f32 %v368_v26, %v356_v50  ;;  %v312_v59 = vmul.f32 %v299_v16, %v293_v54  ;;  %v313_v60 = vmul.f32 %v303_v17, %v293_v54  ;;  %v529_v47 = vld [vmem:[#allocation2 + $0x1b0] sm:$0xff]  ;;  %v532_v49 = vld [vmem:[#allocation2 + $0x1c8] sm:$0xff]  ;;  %v534_v50 = vld [vmem:[#allocation2 + $0x1d8] sm:$0xff] }
  0xc0   : > { %v403_v61 = vadd.f32 %v1305_v56, %v1303_v55  ;;  %v415_v62 = vmul.f32 %v1303_v55, %v1303_v55  ;;  %v416_v63 = vmul.f32 %v1305_v56, %v1305_v56  ;;  %v389_v0 = vmul.f32 0.01, %v373_v38 }
  0xc1   : > { %v357_v1 = vadd.f32 %v349_v52, %v312_v59  ;;  %v358_v2 = vadd.f32 %v350_v53, %v313_v60  ;;  %v390_v3 = vmul.f32 0.01, %v374_v39  ;;  %vm383_vm4 = vcmp.gt.f32.partialorder %v375_v57, 0.0  ;;  %v531_v52 = vld [vmem:[#allocation2 + $0x1c0] sm:$0xff]  ;;  %v533_v53 = vld [vmem:[#allocation2 + $0x1d0] sm:$0xff] }
  0xc2   : > { %404 = vadd.xlane.f32.xlu1 %v403_v61  ;;  %v423_v4 = vadd.f32 %v416_v63, %v415_v62  ;;  %v1314_v5 = vsel %vm381_vm2, %v373_v38, %v389_v0  ;;  %vm384_vm5 = vcmp.gt.f32.partialorder %v376_v58, 0.0  ;;  %v391_v6 = vmul.f32 0.01, %v375_v57  ;;  %v526_v38 = vld [vmem:[#allocation2 + $0x198] sm:$0xff]  ;;  %v535_v60 = vld [vmem:[#allocation2 + $0x1e0] sm:$0xff]  ;;  %v537_v61 = vld [vmem:[#allocation2 + $0x1f0] sm:$0xff] }
  0xc3   : > { %v377_v7 = vadd.f32 %v364_v25, %v357_v1  ;;  %v378_v8 = vadd.f32 %v368_v26, %v358_v2  ;;  %v1317_v9 = vsel %vm382_vm3, %v374_v39, %v390_v3  ;;  %v417_v12 = vmul.f32 %v1314_v5, %v1314_v5 }
  0xc4   : > { %424 = vadd.xlane.f32.xlu0 %v423_v4  ;;  %v418_v13 = vmul.f32 %v1317_v9, %v1317_v9  ;;  %v392_v14 = vmul.f32 0.01, %v376_v58  ;;  %v1323_v15 = vsel %vm383_vm4, %v375_v57, %v391_v6  ;;  %v406_v19 = vadd.f32 %v1317_v9, %v1314_v5  ;;  %v536_v57 = vld [vmem:[#allocation2 + $0x1e8] sm:$0xff] }
  0xc5   : > { %v419_v16 = vmul.f32 %v1323_v15, %v1323_v15  ;;  %vm385_vm6 = vcmp.gt.f32.partialorder %v377_v7, 0.0  ;;  %vm386_vm7 = vcmp.gt.f32.partialorder %v378_v8, 0.0  ;;  %v393_v17 = vmul.f32 0.01, %v377_v7 }
  0xc6   : > { %v426_v18 = vadd.f32 %v418_v13, %v417_v12  ;;  %v1330_v20 = vsel %vm384_vm5, %v376_v58, %v392_v14  ;;  %v394_v21 = vmul.f32 0.01, %v378_v8  ;;  %v1042_v33 = vpack.c.bf16 %v522_v32, %v520_v31  ;;  %v538_v58 = vld [vmem:[#allocation2 + $0x1f8] sm:$0xff] }
  0xc7   : > { %v420_v22 = vmul.f32 %v1330_v20, %v1330_v20  ;;  %v1334_v23 = vsel %vm385_vm6, %v377_v7, %v393_v17  ;;  %v409_v28 = vadd.f32 %v1330_v20, %v1323_v15  ;;  %v1044_v36 = vpack.c.bf16 %v521_v35, %v519_v34 }
  0xc8   : > { %427 = vadd.xlane.f32.xlu1 %v426_v18  ;;  %407 = vadd.xlane.f32.xlu0 %v406_v19  ;;  %v1336_v24 = vsel %vm386_vm7, %v378_v8, %v394_v21  ;;  %v421_v25 = vmul.f32 %v1334_v23, %v1334_v23  ;;  %v1046_v39 = vpack.c.bf16 %v526_v38, %v524_v37  ;;  %vm865_vm0 = vcmask 31744  }
  0xc9   : > { %v429_v26 = vadd.f32 %v420_v22, %v419_v16  ;;  %v422_v27 = vmul.f32 %v1336_v24, %v1336_v24  ;;  %v412_v30 = vadd.f32 %v1336_v24, %v1334_v23  ;;  %1043 = vmatprep.subr.bf16.mxu0 %v1042_v33  ;;  %v1048_v42 = vpack.c.bf16 %v525_v41, %v523_v40 }
  0xca   : > { %1045 = vmatpush1.bf16.msra.mxu0 %v1044_v36  ;;  %v1050_v45 = vpack.c.bf16 %v530_v44, %v528_v43  ;;  %v1052_v48 = vpack.c.bf16 %v529_v47, %v527_v46  ;;  %v1054_v51 = vpack.c.bf16 %v534_v50, %v532_v49  ;;  %v1056_v54 = vpack.c.bf16 %v533_v53, %v531_v52  ;;  %v755_v52 = vld [vmem:[%s1518_s4 + $0x90] sm:$0xff]  ;;  %v756_v53 = vld [vmem:[%s1518_s4 + $0x98] sm:$0xff] }
  0xcb   : > { %v432_v29 = vadd.f32 %v422_v27, %v421_v25  ;;  %1047 = vmatprep.subr.bf16.mxu0 %v1046_v39  ;;  %v1058_v59 = vpack.c.bf16 %v538_v58, %v536_v57  ;;  %v1060_v62 = vpack.c.bf16 %v537_v61, %v535_v60  ;;  %v1066_v57 = vpack.c.bf16 %v756_v53, %v755_v52  ;;  %v739_v58 = vld [vmem:[%s1518_s4 + $0x10] sm:$0xff]  ;;  %v757_v60 = vld [vmem:[%s1518_s4 + $0xa0] sm:$0xff]  ;;  %v758_v61 = vld [vmem:[%s1518_s4 + $0xa8] sm:$0xff] }
  0xcc   : > { %430 = vadd.xlane.f32.xlu1 %v429_v26  ;;  %410 = vadd.xlane.f32.xlu0 %v409_v28  ;;  %v759_v52 = vld [vmem:[%s1518_s4 + $0xb0] sm:$0xff]  ;;  %v760_v53 = vld [vmem:[%s1518_s4 + $0xb8] sm:$0xff] }
  0xce   : > { %1049 = vmatpush1.bf16.msra.mxu0 %v1048_v42 }
  0xcf   : > { %1051 = vmatprep.subr.bf16.mxu0 %v1050_v45 }
  0xd0   : > { %433 = vadd.xlane.f32.xlu1 %v432_v29  ;;  %413 = vadd.xlane.f32.xlu0 %v412_v30 }
  0xd2   : > { %1053 = vmatpush1.bf16.msra.mxu0 %v1052_v48 }
  0xd3   : > { %1055 = vmatprep.subr.bf16.mxu0 %v1054_v51  ;;  %v738_v51 = vld [vmem:[%s1518_s4 + $0x8] sm:$0xff] }
  0xd6   : > { %1057 = vmatpush1.bf16.msra.mxu0 %v1056_v54 }
  0xd7   : > { %1059 = vmatprep.subr.bf16.mxu0 %v1058_v59  ;;  %v740_v59 = vld [vmem:[%s1518_s4 + $0x18] sm:$0xff] }
  0xda   : > { %1061 = vmatpush1.bf16.msra.mxu0 %v1060_v62  ;;  %v1068_v62 = vpack.c.bf16 %v740_v59, %v739_v58  ;;  %v744_v58 = vld [vmem:[%s1518_s4 + $0x38] sm:$0xff] }
 0x14f   : > { %v405_v63 = vpop.xlane.xlu1 %404 }
 0x150   : > { %v435_v0 = vmul.f32 0.00390625, %v405_v63  ;;  %v1070_v63 = vpack.c.bf16 %v758_v61, %v757_v60  ;;  %v761_v60 = vld [vmem:[%s1518_s4 + $0xc0] sm:$0xff]  ;;  %v762_v61 = vld [vmem:[%s1518_s4 + $0xc8] sm:$0xff] }
 0x151   : > { %v425_v1 = vpop.xlane.xlu0 %424 }
 0x152   : > { %v443_v2 = vmul.f32 %v435_v0, %v435_v0  ;;  %v439_v3 = vmul.f32 0.00390625, %v425_v1  ;;  %v451_v33 = vsub.f32 %v1303_v55, %v435_v0  ;;  %v452_v34 = vsub.f32 %v1305_v56, %v435_v0  ;;  %v741_v0 = vld [vmem:[%s1518_s4 + $0x20] sm:$0xff]  ;;  %v742_v1 = vld [vmem:[%s1518_s4 + $0x28] sm:$0xff] }
 0x154   : > { %v447_v4 = vsub.f32 %v439_v3, %v443_v2  ;;  %v1072_v2 = vpack.c.bf16 %v742_v1, %v741_v0  ;;  %v950_v3 = vld [vmem:[%s1516_s2 + $0x1] ss:$2 sm:$0x3]  ;;  %v746_v0 = vld [vmem:[%s1518_s4 + $0x48] sm:$0xff] }
 0x155   : > { %v428_v6 = vpop.xlane.xlu1 %427  ;;  %v408_v7 = vpop.xlane.xlu0 %407 }
 0x156   : > { %v459_v8 = vadd.f32 1e-05, %v447_v4  ;;  %v436_v12 = vmul.f32 0.00390625, %v408_v7  ;;  %v440_v13 = vmul.f32 0.00390625, %v428_v6  ;;  %v545_v4 = vrot.slane %v950_v3, %v1284_v10 }
 0x157   : > { %v549_v6 = vrot.slane %v950_v3, %v1286_v11  ;;  %v764_v3 = vld [vmem:[%s1518_s4 + $0xd8] sm:$0xff] }
 0x158   : > { %1122 = vrsqrt.f32 %v459_v8  ;;  %v444_v14 = vmul.f32 %v436_v12, %v436_v12  ;;  %v453_v40 = vsub.f32 %v1314_v5, %v436_v12  ;;  %v454_v41 = vsub.f32 %v1317_v9, %v436_v12 }
 0x159   : > { %v431_v16 = vpop.xlane.xlu1 %430  ;;  %v411_v17 = vpop.xlane.xlu0 %410 }
 0x15a   : > { %v448_v18 = vsub.f32 %v440_v13, %v444_v14  ;;  %v437_v19 = vmul.f32 0.00390625, %v411_v17  ;;  %v441_v22 = vmul.f32 0.00390625, %v431_v16 }
 0x15c   : > { %v460_v21 = vadd.f32 1e-05, %v448_v18  ;;  %v445_v25 = vmul.f32 %v437_v19, %v437_v19  ;;  %v455_v55 = vsub.f32 %v1323_v15, %v437_v19  ;;  %v456_v56 = vsub.f32 %v1330_v20, %v437_v19  ;;  %v753_v15 = vld [vmem:[%s1518_s4 + $0x80] sm:$0xff]  ;;  %v754_v20 = vld [vmem:[%s1518_s4 + $0x88] sm:$0xff] }
 0x15d   : > { %v434_v26 = vpop.xlane.xlu1 %433  ;;  %v414_v27 = vpop.xlane.xlu0 %413 }
 0x15e   : > { %1124 = vrsqrt.f32 %v460_v21  ;;  %v449_v28 = vsub.f32 %v441_v22, %v445_v25  ;;  %v438_v29 = vmul.f32 0.00390625, %v414_v27  ;;  %v442_v31 = vmul.f32 0.00390625, %v434_v26 }
 0x160   : > { %v461_v30 = vadd.f32 1e-05, %v449_v28  ;;  %v446_v32 = vmul.f32 %v438_v29, %v438_v29  ;;  %v457_v48 = vsub.f32 %v1334_v23, %v438_v29  ;;  %v458_v49 = vsub.f32 %v1336_v24, %v438_v29  ;;  %v737_v23 = vld [vmem:[%s1518_s4] sm:$0xff] }
 0x161   : > { %v1062_v24 = vpack.c.bf16 %v754_v20, %v753_v15  ;;  %v1064_v54 = vpack.c.bf16 %v738_v51, %v737_v23 }
 0x162   : > { %v1123_v35 = vpop.eup %1122  ;;  %1126 = vrsqrt.f32 %v461_v30  ;;  %v450_v36 = vsub.f32 %v442_v31, %v446_v32 }
 0x163   : > { %v468_v37 = vmul.f32 %v1123_v35, %v452_v34  ;;  %v467_v38 = vmul.f32 %v1123_v35, %v451_v33  ;;  %1063 = vmatprep.subr.bf16.mxu1 %v1062_v24 }
 0x164   : > { %v462_v39 = vadd.f32 1e-05, %v450_v36  ;;  %1065 = vmatpush3.bf16.msra.mxu1 %v1064_v54  ;;  %v1074_v54 = vpack.c.bf16 %v760_v53, %v759_v52 }
 0x165   : > { %616 = vmatprep.mubr.f32.mxu0 %v468_v37  ;;  %1067 = vmatprep.subr.bf16.mxu1 %v1066_v57  ;;  %v743_v57 = vld [vmem:[%s1518_s4 + $0x30] sm:$0xff] }
 0x166   : > { %1128 = vrsqrt.f32 %v462_v39  ;;  %617 = vmatmul.mubr.f32.vlgmr.msra.gmra.mrb[0].mxu0 %v467_v38  ;;  %v1076_v59 = vpack.c.bf16 %v744_v58, %v743_v57 }
 0x168   : > { %v1125_v42 = vpop.eup %1124  ;;  %1069 = vmatpush3.bf16.msra.mxu1 %v1068_v62  ;;  %v1078_v62 = vpack.c.bf16 %v762_v61, %v761_v60 }
 0x169   : > { %v470_v43 = vmul.f32 %v1125_v42, %v454_v41  ;;  %v469_v44 = vmul.f32 %v1125_v42, %v453_v40  ;;  %1071 = vmatprep.subr.bf16.mxu1 %v1070_v63  ;;  %v745_v63 = vld [vmem:[%s1518_s4 + $0x40] sm:$0xff] }
 0x16a   : > { %v1080_v1 = vpack.c.bf16 %v746_v0, %v745_v63 }
 0x16b   : > { %622 = vmatprep.mubr.f32.mxu0 %v470_v43 }
 0x16c   : > { %v1127_v45 = vpop.eup %1126  ;;  %623 = vmatmul.mubr.f32.gmra.mrb[2].mxu0 %v469_v44  ;;  %1073 = vmatpush3.bf16.msra.mxu1 %v1072_v2  ;;  %v763_v2 = vld [vmem:[%s1518_s4 + $0xd0] sm:$0xff] }
 0x16d   : > { %v472_v46 = vmul.f32 %v1127_v45, %v456_v56  ;;  %v471_v47 = vmul.f32 %v1127_v45, %v455_v55  ;;  %1075 = vmatprep.subr.bf16.mxu1 %v1074_v54 }
 0x16f   : > { %628 = vmatprep.mubr.f32.mxu0 %v472_v46 }
 0x170   : > { %v1129_v5 = vpop.eup %1128  ;;  %629 = vmatmul.mubr.f32.gmra.mrb[4].mxu0 %v471_v47  ;;  %1077 = vmatpush3.bf16.msra.mxu1 %v1076_v59 }
 0x171   : > { %v474_v9 = vmul.f32 %v1129_v5, %v458_v49  ;;  %v473_v50 = vmul.f32 %v1129_v5, %v457_v48  ;;  %1079 = vmatprep.subr.bf16.mxu1 %v1078_v62 }
 0x173   : > { %634 = vmatprep.mubr.f32.mxu0 %v474_v9 }
 0x174   : > { %635 = vmatmul.mubr.f32.gmra.mrb[6].mxu0 %v473_v50  ;;  %1081 = vmatpush3.bf16.msra.mxu1 %v1080_v1 }
 0x239   : > { %v618_v7 = vpop.f32.mrb[0].mxu0 }
 0x23a   : > { %v619_v8 = vadd.f32 %v618_v7, %v545_v4  ;;  %v620_v12 = vpop.f32.mrb[1].mxu0  ;;  %v748_v7 = vld [vmem:[%s1518_s4 + $0x58] sm:$0xff] }
 0x23b   : > { %v621_v13 = vadd.f32 %v620_v12, %v549_v6  ;;  %v765_v12 = vld [vmem:[%s1518_s4 + $0xe0] sm:$0xff] }
 0x23c   : > { %vm641_vm8 = vcmp.gt.f32.partialorder %v619_v8, 0.0  ;;  %v649_v14 = vmul.f32 0.01, %v619_v8 }
 0x23d   : > { %vm642_vm9 = vcmp.gt.f32.partialorder %v621_v13, 0.0  ;;  %v650_v16 = vmul.f32 0.01, %v621_v13 }
 0x23e   : > { %v1395_v17 = vsel %vm641_vm8, %v619_v8, %v649_v14 }
 0x23f   : > { %v624_v18 = vpop.f32.mrb[2].mxu0  ;;  %v1397_v19 = vsel %vm642_vm9, %v621_v13, %v650_v16  ;;  %v677_v21 = vmul.f32 %v1395_v17, %v1395_v17  ;;  %v766_v13 = vld [vmem:[%s1518_s4 + $0xe8] sm:$0xff]  ;;  %v749_v16 = vld [vmem:[%s1518_s4 + $0x60] sm:$0xff] }
 0x240   : > { %v625_v22 = vadd.f32 %v624_v18, %v545_v4  ;;  %v626_v10 = vpop.f32.mrb[3].mxu0  ;;  %v665_v11 = vadd.f32 %v1397_v19, %v1395_v17  ;;  %v678_v25 = vmul.f32 %v1397_v19, %v1397_v19  ;;  %v1086_v14 = vpack.c.bf16 %v766_v13, %v765_v12  ;;  %v750_v18 = vld [vmem:[%s1518_s4 + $0x68] sm:$0xff] }
 0x241   : > { %v627_v26 = vadd.f32 %v626_v10, %v549_v6  ;;  %v768_v10 = vld [vmem:[%s1518_s4 + $0xf8] sm:$0xff] }
 0x242   : > { %vm643_vm10 = vcmp.gt.f32.partialorder %v625_v22, 0.0  ;;  %v651_v27 = vmul.f32 0.01, %v625_v22  ;;  %666 = vadd.xlane.f32.xlu0 %v665_v11  ;;  %v685_v28 = vadd.f32 %v678_v25, %v677_v21  ;;  %v1088_v21 = vpack.c.bf16 %v750_v18, %v749_v16  ;;  %v751_v25 = vld [vmem:[%s1518_s4 + $0x70] sm:$0xff] }
 0x243   : > { %vm644_vm11 = vcmp.gt.f32.partialorder %v627_v26, 0.0  ;;  %v652_v29 = vmul.f32 0.01, %v627_v26  ;;  %v630_v30 = vpop.f32.mrb[4].mxu0 }
 0x244   : > { %v631_v31 = vadd.f32 %v630_v30, %v545_v4  ;;  %686 = vadd.xlane.f32.xlu1 %v685_v28  ;;  %v632_v32 = vpop.f32.mrb[5].mxu0  ;;  %v1405_v33 = vsel %vm643_vm10, %v625_v22, %v651_v27  ;;  %v767_v22 = vld [vmem:[%s1518_s4 + $0xf0] sm:$0xff] }
 0x245   : > { %v633_v34 = vadd.f32 %v632_v32, %v549_v6  ;;  %v1407_v35 = vsel %vm644_vm11, %v627_v26, %v652_v29  ;;  %v679_v36 = vmul.f32 %v1405_v33, %v1405_v33  ;;  %v1090_v11 = vpack.c.bf16 %v768_v10, %v767_v22  ;;  %v752_v26 = vld [vmem:[%s1518_s4 + $0x78] sm:$0xff] }
 0x246   : > { %vm645_vm12 = vcmp.gt.f32.partialorder %v631_v31, 0.0  ;;  %v653_v37 = vmul.f32 0.01, %v631_v31  ;;  %v668_v38 = vadd.f32 %v1407_v35, %v1405_v33  ;;  %v680_v39 = vmul.f32 %v1407_v35, %v1407_v35 }
 0x247   : > { %vm646_vm13 = vcmp.gt.f32.partialorder %v633_v34, 0.0  ;;  %v654_v40 = vmul.f32 0.01, %v633_v34  ;;  %v636_v41 = vpop.f32.mrb[6].mxu0  ;;  %v1092_v27 = vpack.c.bf16 %v752_v26, %v751_v25 }
 0x248   : > { %v637_v42 = vadd.f32 %v636_v41, %v545_v4  ;;  %669 = vadd.xlane.f32.xlu0 %v668_v38  ;;  %v638_v43 = vpop.f32.mrb[7].mxu0  ;;  %v688_v44 = vadd.f32 %v680_v39, %v679_v36  ;;  %v1415_v55 = vsel %vm645_vm12, %v631_v31, %v653_v37  ;;  %v1082_v4 = vpack.c.bf16 %v764_v3, %v763_v2 }
 0x249   : > { %v639_v56 = vadd.f32 %v638_v43, %v549_v6  ;;  %v1417_v45 = vsel %vm646_vm13, %v633_v34, %v654_v40  ;;  %v681_v46 = vmul.f32 %v1415_v55, %v1415_v55  ;;  %v747_v6 = vld [vmem:[%s1518_s4 + $0x50] sm:$0xff] }
 0x24a   : > { %vm647_vm14 = vcmp.gt.f32.partialorder %v637_v42, 0.0  ;;  %v655_v47 = vmul.f32 0.01, %v637_v42  ;;  %689 = vadd.xlane.f32.xlu1 %v688_v44  ;;  %v671_v48 = vadd.f32 %v1417_v45, %v1415_v55  ;;  %v682_v49 = vmul.f32 %v1417_v45, %v1417_v45  ;;  %1083 = vmatprep.subr.bf16.mxu1 %v1082_v4 }
 0x24b   : > { %vm648_vm15 = vcmp.gt.f32.partialorder %v639_v56, 0.0  ;;  %v656_v5 = vmul.f32 0.01, %v639_v56  ;;  %v1084_v8 = vpack.c.bf16 %v748_v7, %v747_v6 }
 0x24c   : > { %672 = vadd.xlane.f32.xlu0 %v671_v48  ;;  %v691_v9 = vadd.f32 %v682_v49, %v681_v46  ;;  %v1425_v50 = vsel %vm647_vm14, %v637_v42, %v655_v47 }
 0x24d   : > { %v1427_v15 = vsel %vm648_vm15, %v639_v56, %v656_v5  ;;  %v683_v20 = vmul.f32 %v1425_v50, %v1425_v50  ;;  %1085 = vmatpush3.bf16.msra.mxu1 %v1084_v8 }
 0x24e   : > { %692 = vadd.xlane.f32.xlu1 %v691_v9  ;;  %v674_v23 = vadd.f32 %v1427_v15, %v1425_v50  ;;  %v684_v24 = vmul.f32 %v1427_v15, %v1427_v15  ;;  %1087 = vmatprep.subr.bf16.mxu1 %v1086_v14 }
 0x250   : > { %675 = vadd.xlane.f32.xlu0 %v674_v23  ;;  %v694_v51 = vadd.f32 %v684_v24, %v683_v20 }
 0x251   : > { %1089 = vmatpush3.bf16.msra.mxu1 %v1088_v21 }
 0x252   : > { %695 = vadd.xlane.f32.xlu1 %v694_v51  ;;  %1091 = vmatprep.subr.bf16.mxu1 %v1090_v11 }
 0x255   : > { %1093 = vmatpush3.bf16.msra.mxu1 %v1092_v27 }
 0x2cf   : > { %v667_v28 = vpop.xlane.xlu0 %666 }
 0x2d0   : > { %v697_v29 = vmul.f32 0.00390625, %v667_v28 }
 0x2d1   : > { %v687_v30 = vpop.xlane.xlu1 %686 }
 0x2d2   : > { %v701_v31 = vmul.f32 0.00390625, %v687_v30  ;;  %v705_v32 = vmul.f32 %v697_v29, %v697_v29  ;;  %v713_v51 = vsub.f32 %v1395_v17, %v697_v29  ;;  %v714_v53 = vsub.f32 %v1397_v19, %v697_v29 }
 0x2d4   : > { %v709_v34 = vsub.f32 %v701_v31, %v705_v32 }
 0x2d5   : > { %v670_v36 = vpop.xlane.xlu0 %669 }
 0x2d6   : > { %v721_v37 = vadd.f32 1e-05, %v709_v34  ;;  %v698_v38 = vmul.f32 0.00390625, %v670_v36 }
 0x2d7   : > { %v690_v39 = vpop.xlane.xlu1 %689 }
 0x2d8   : > { %1130 = vrsqrt.f32 %v721_v37  ;;  %v702_v40 = vmul.f32 0.00390625, %v690_v39  ;;  %v706_v41 = vmul.f32 %v698_v38, %v698_v38  ;;  %v715_v61 = vsub.f32 %v1405_v33, %v698_v38 }
 0x2d9   : > { %v673_v42 = vpop.xlane.xlu0 %672  ;;  %v716_v62 = vsub.f32 %v1407_v35, %v698_v38 }
 0x2da   : > { %v699_v43 = vmul.f32 0.00390625, %v673_v42  ;;  %v710_v44 = vsub.f32 %v702_v40, %v706_v41 }
 0x2db   : > { %v693_v56 = vpop.xlane.xlu1 %692 }
 0x2dc   : > { %v703_v46 = vmul.f32 0.00390625, %v693_v56  ;;  %v707_v47 = vmul.f32 %v699_v43, %v699_v43  ;;  %v722_v48 = vadd.f32 1e-05, %v710_v44  ;;  %v717_v17 = vsub.f32 %v1415_v55, %v699_v43 }
 0x2dd   : > { %v676_v49 = vpop.xlane.xlu0 %675  ;;  %v718_v19 = vsub.f32 %v1417_v45, %v699_v43  ;;  %v951_v45 = vld [vmem:[%s1519_s5] ss:$0 sm:$0xff] }
 0x2de   : > { %v711_v5 = vsub.f32 %v703_v46, %v707_v47  ;;  %v700_v9 = vmul.f32 0.00390625, %v676_v49  ;;  %1132 = vrsqrt.f32 %v722_v48 }
 0x2df   : > { %v696_v20 = vpop.xlane.xlu1 %695 }
 0x2e0   : > { %v723_v23 = vadd.f32 1e-05, %v711_v5  ;;  %v704_v24 = vmul.f32 0.00390625, %v696_v20  ;;  %v708_v52 = vmul.f32 %v700_v9, %v700_v9  ;;  %v719_v6 = vsub.f32 %v1425_v50, %v700_v9 }
 0x2e1   : > { %v720_v7 = vsub.f32 %v1427_v15, %v700_v9 }
 0x2e2   : > { %v1131_v54 = vpop.eup %1130  ;;  %1134 = vrsqrt.f32 %v723_v23  ;;  %v712_v57 = vsub.f32 %v704_v24, %v708_v52 }
 0x2e3   : > { %v730_v58 = vmul.f32 %v1131_v54, %v714_v53  ;;  %v729_v59 = vmul.f32 %v1131_v54, %v713_v51 }
 0x2e4   : > { %v724_v60 = vadd.f32 1e-05, %v712_v57 }
 0x2e5   : > { %840 = vmatprep.mubr.f32.mxu1 %v730_v58 }
 0x2e6   : > { %841 = vmatmul.mubr.f32.vlgmr.msra.gmra.mrb[0].mxu1 %v729_v59  ;;  %1136 = vrsqrt.f32 %v724_v60 }
 0x2e8   : > { %v1133_v63 = vpop.eup %1132 }
 0x2e9   : > { %v732_v0 = vmul.f32 %v1133_v63, %v716_v62  ;;  %v731_v1 = vmul.f32 %v1133_v63, %v715_v61 }
 0x2eb   : > { %845 = vmatprep.mubr.f32.mxu1 %v732_v0 }
 0x2ec   : > { %v1135_v2 = vpop.eup %1134  ;;  %846 = vmatmul.mubr.f32.gmra.mrb[2].mxu1 %v731_v1 }
 0x2ed   : > { %v734_v3 = vmul.f32 %v1135_v2, %v718_v19  ;;  %v733_v4 = vmul.f32 %v1135_v2, %v717_v17 }
 0x2ef   : > { %850 = vmatprep.mubr.f32.mxu1 %v734_v3 }
 0x2f0   : > { %v1137_v33 = vpop.eup %1136  ;;  %851 = vmatmul.mubr.f32.gmra.mrb[4].mxu1 %v733_v4 }
 0x2f1   : > { %v736_v35 = vmul.f32 %v1137_v33, %v720_v7  ;;  %v735_v8 = vmul.f32 %v1137_v33, %v719_v6 }
 0x2f3   : > { %855 = vmatprep.mubr.f32.mxu1 %v736_v35 }
 0x2f4   : > { %856 = vmatmul.mubr.f32.gmra.mrb[6].mxu1 %v735_v8 }
 0x3b9   : > { %v986_v55 = vpop.f32.mrb[0].mxu1 }
 0x3ba   : > { %v987_v12 = vpop.f32.mrb[1].mxu1 }
 0x3bb   : > { %v988_v13 = vadd.f32 %v987_v12, %v986_v55 }
 0x3bd   : > { %v843_v14 = vadd.f32 %v988_v13, %v951_v45 }
 0x3bf   : > { %1138 = vtanh.f32 %v843_v14  ;;  %v989_v16 = vpop.f32.mrb[2].mxu1 }
 0x3c0   : > { %v990_v50 = vpop.f32.mrb[3].mxu1 }
 0x3c1   : > { %v991_v18 = vadd.f32 %v990_v50, %v989_v16 }
 0x3c3   : > { %v848_v15 = vadd.f32 %v991_v18, %v951_v45  ;;  %v992_v21 = vpop.f32.mrb[4].mxu1 }
 0x3c4   : > { %v993_v22 = vpop.f32.mrb[5].mxu1 }
 0x3c5   : > { %1140 = vtanh.f32 %v848_v15  ;;  %v994_v10 = vadd.f32 %v993_v22, %v992_v21 }
 0x3c7   : > { %v853_v11 = vadd.f32 %v994_v10, %v951_v45  ;;  %v995_v25 = vpop.f32.mrb[6].mxu1 }
 0x3c8   : > { %v996_v27 = vpop.f32.mrb[7].mxu1 }
 0x3c9   : > { %v1139_v26 = vpop.eup %1138  ;;  %1142 = vtanh.f32 %v853_v11  ;;  %v997_v28 = vadd.f32 %v996_v27, %v995_v25 }
 0x3ca   : > { %866 = vst.msk [vmem:[%s268_s11] sm:$0xff] %vm865_vm0, %v1139_v26 }
 0x3cb   : > { %v858_v29 = vadd.f32 %v997_v28, %v951_v45 }
 0x3cd   : > { %1144 = vtanh.f32 %v858_v29 }
 0x3cf   : > { %v1141_v30 = vpop.eup %1140 }
 0x3d0   : > { %867 = vst.msk [vmem:[%s268_s11 + $0x8] sm:$0xff] %vm865_vm0, %v1141_v30 }
 0x3d3   : > { %v1143_v31 = vpop.eup %1142 }
 0x3d4   : > { %868 = vst.msk [vmem:[%s268_s11 + $0x10] sm:$0xff] %vm865_vm0, %v1143_v31 }
 0x3d7   : > { %v1145_v32 = vpop.eup %1144 }
 0x3d8   : > { %869 = vst.msk [vmem:[%s268_s11 + $0x18] sm:$0xff] %vm865_vm0, %v1145_v32 }
 0x3d9 PF: > { %s17_s21 = sadd.s32 1, %s1184_s21  }
 0x3da   : > { %p14_p3 = scmp.ge.s32.totalorder %s17_s21, 5  }
 0x3dc   :  { %16 = sbr.rel (!%p14_p3) target bundleno = 1 (0x1), region = 81 }
 0x3e3   :  { %892 = vsyncpa [#allocation3], 1 }
 0x3e4   :  { %894 = vsyncpa [#allocation3 + $0x1], 1 }

</bundles_post_ra>
